<compile_context>
chip_gen: v5e
topology: v5e:2x2
jax: 0.10.0
libtpu: 0.0.40
codegen_flags: <defaults>
</compile_context>

<pallas_src>
import functools

import jax
import jax.numpy as jnp
from jax.experimental import pallas as pl
from jax.experimental.pallas import tpu as pltpu

_LANE = 128


def _round_up(x: int, m: int) -> int:
    return ((x + m - 1) // m) * m


def _sublane(dtype) -> int:
    size = jnp.dtype(dtype).itemsize
    if size >= 4:
        return 8
    if size == 2:
        return 16
    return 32


def _vmem_capacity_bytes() -> int:
    try:
        info = pltpu.get_tpu_info()
        cap = int(getattr(info, "vmem_capacity_bytes", 0) or 0)
        if cap > 0:
            return cap
    except Exception:
        pass
    return 64 * 1024 * 1024  # conservative default (v7x per-TC VMEM)


_VMEM_CAP = _vmem_capacity_bytes()
# Scoped-VMEM limit handed to Mosaic: generous on 128 MiB parts (v5e/v6e),
# conservative on v7x (64 MiB per TensorCore).
_VMEM_LIMIT_BYTES = min(int(_VMEM_CAP * 0.70), 100 * 1024 * 1024)
# Budget for the fully VMEM-resident fused path. The dispatcher adds an
# allowance for the unrolled layer loop's live f32 temporaries and possible
# buffer duplication, so this can be larger on 128 MiB parts.
_FUSED_VMEM_BUDGET_BYTES = (
    16 * 1024 * 1024 if _VMEM_CAP <= 64 * 1024 * 1024 else 36 * 1024 * 1024
)


def _pad_2d(a, rows, cols):
    """Zero-pad a 2-D array; returns `a` unchanged (no copy) when aligned."""
    r, c = a.shape
    if (r, c) == (rows, cols):
        return a
    return jnp.zeros((rows, cols), a.dtype).at[:r, :c].set(a)


# ---------------------------------------------------------------------------
# Fused path: entire MLP in a single pallas_call, activation stays on-chip.
# ---------------------------------------------------------------------------
def _fused_mlp_kernel(*refs, num_layers):
    """refs = (x, w_0..w_{L-1}, b_0..b_{L-1}, out).

    x: (tmb, Kp_0); w_l: (Kp_l, Np_l); b_l: (1, Np_l); out: (tmb, Np_{L-1}).
    """
    x_ref = refs[0]
    w_refs = refs[1:1 + num_layers]
    b_refs = refs[1 + num_layers:1 + 2 * num_layers]
    o_ref = refs[1 + 2 * num_layers]

    act = x_ref[...]
    for layer in range(num_layers):  # static unroll; L is small
        y = jnp.dot(act, w_refs[layer][...], preferred_element_type=jnp.float32)
        y = y + b_refs[layer][...].astype(jnp.float32)  # (1, Np) broadcasts
        if layer < num_layers - 1:
            y = jnp.maximum(y, 0.0)
        act = y.astype(x_ref.dtype)
    o_ref[...] = act.astype(o_ref.dtype)


def mlp_forward_fused(x, params, *, batch_tile=512, compute_dtype=None):
    B, Din = x.shape
    Dout = params[-1][0].shape[1]
    if compute_dtype is not None:
        x = x.astype(compute_dtype)
        params = [(w.astype(compute_dtype), b.astype(compute_dtype))
                  for w, b in params]
    dtype = x.dtype
    L = len(params)
    sub = _sublane(dtype)

    # Per-layer lane-dense padding: kps[l] = padded input width of layer l,
    # kps[l+1] = padded output width (chains automatically between layers).
    kps = [_round_up(Din, _LANE)] + [_round_up(w.shape[1], _LANE)
                                     for w, _ in params]

    tmb = min(_round_up(B, sub), batch_tile)   # dtype-correct sublane rounding
    Bp = _round_up(B, tmb)

    x_p = _pad_2d(x, Bp, kps[0])
    w_ps = [_pad_2d(w, kps[l], kps[l + 1]) for l, (w, _) in enumerate(params)]
    b_ps = [_pad_2d(b.reshape(1, -1), 1, kps[l + 1])
            for l, (_, b) in enumerate(params)]

    in_specs = [pl.BlockSpec((tmb, kps[0]), lambda i: (i, 0))]
    for l in range(L):  # weights: constant block index -> stay VMEM-resident
        in_specs.append(pl.BlockSpec((kps[l], kps[l + 1]), lambda i: (0, 0)))
    for l in range(L):
        in_specs.append(pl.BlockSpec((1, kps[l + 1]), lambda i: (0, 0)))
    out_spec = pl.BlockSpec((tmb, kps[-1]), lambda i: (i, 0))

    out_p = pl.pallas_call(
        functools.partial(_fused_mlp_kernel, num_layers=L),
        out_shape=jax.ShapeDtypeStruct((Bp, kps[-1]), dtype),
        grid_spec=pltpu.PrefetchScalarGridSpec(
            num_scalar_prefetch=0,
            grid=(Bp // tmb,),
            in_specs=in_specs,
            out_specs=out_spec,
        ),
        compiler_params=pltpu.CompilerParams(
            dimension_semantics=("parallel",),
            vmem_limit_bytes=_VMEM_LIMIT_BYTES,
        ),
    )(x_p, *w_ps, *b_ps)
    return out_p[:B, :Dout]


# ---------------------------------------------------------------------------
# Tiled path: per-layer pallas_call with (M, N, K) grid for larger models.
# ---------------------------------------------------------------------------
def _linear_tiled_kernel_out_acc(x_ref, w_ref, b_ref, o_ref, *, apply_relu):
    """f32 output: accumulate directly into the (k-resident) output tile."""
    k = pl.program_id(2)

    @pl.when(k == 0)
    def _():
        # Fold the bias into the accumulator init (no per-step broadcast).
        o_ref[...] = jnp.broadcast_to(
            b_ref[...].astype(jnp.float32), o_ref.shape)

    o_ref[...] += jnp.dot(x_ref[...], w_ref[...],
                          preferred_element_type=jnp.float32)

    if apply_relu:
        @pl.when(k == pl.num_programs(2) - 1)
        def _():
            o_ref[...] = jnp.maximum(o_ref[...], 0.0)


def _linear_tiled_kernel_scratch_acc(x_ref, w_ref, b_ref, o_ref, acc_ref, *,
                                     apply_relu):
    """Non-f32 output: f32 VMEM accumulator, cast + store on last k step."""
    k = pl.program_id(2)

    @pl.when(k == 0)
    def _():
        acc_ref[...] = jnp.broadcast_to(
            b_ref[...].astype(jnp.float32), acc_ref.shape)

    acc_ref[...] += jnp.dot(x_ref[...], w_ref[...],
                            preferred_element_type=jnp.float32)

    @pl.when(k == pl.num_programs(2) - 1)
    def _():
        y = acc_ref[...]
        if apply_relu:
            y = jnp.maximum(y, 0.0)
        o_ref[...] = y.astype(o_ref.dtype)


def _largest_tile(dim_padded: int, pref: int) -> int:
    """Largest multiple of 128 that is <= pref and divides dim_padded."""
    t = min(pref, dim_padded)
    t -= t % _LANE
    while t >= _LANE:
        if dim_padded % t == 0:
            return t
        t -= _LANE
    return _LANE


def _pallas_linear_tiled(x, w, b, *, apply_relu, tm, tn, tk):
    """x: (Mp, Kp), w: (Kp, Np), b: (1, Np); all padded to tile multiples."""
    M, K = x.shape
    N = w.shape[1]
    if x.dtype == jnp.float32:
        kernel = functools.partial(_linear_tiled_kernel_out_acc,
                                   apply_relu=apply_relu)
        scratch = []
    else:
        kernel = functools.partial(_linear_tiled_kernel_scratch_acc,
                                   apply_relu=apply_relu)
        scratch = [pltpu.VMEM((tm, tn), jnp.float32)]
    return pl.pallas_call(
        kernel,
        out_shape=jax.ShapeDtypeStruct((M, N), x.dtype),
        grid_spec=pltpu.PrefetchScalarGridSpec(
            num_scalar_prefetch=0,
            grid=(M // tm, N // tn, K // tk),
            in_specs=[
                pl.BlockSpec((tm, tk), lambda i, j, k: (i, k)),
                pl.BlockSpec((tk, tn), lambda i, j, k: (k, j)),
                pl.BlockSpec((1, tn), lambda i, j, k: (0, j)),
            ],
            out_specs=pl.BlockSpec((tm, tn), lambda i, j, k: (i, j)),
            scratch_shapes=scratch,
        ),
        compiler_params=pltpu.CompilerParams(
            dimension_semantics=("parallel", "parallel", "arbitrary"),
            vmem_limit_bytes=_VMEM_LIMIT_BYTES,
        ),
    )(x, w, b)


def mlp_forward_tiled(x, params, *, tm=512, tn=512, tk=512, compute_dtype=None):
    B, Din = x.shape
    Dout = params[-1][0].shape[1]
    if compute_dtype is not None:
        x = x.astype(compute_dtype)
        params = [(w.astype(compute_dtype), b.astype(compute_dtype))
                  for w, b in params]
    dtype = x.dtype
    sub = _sublane(dtype)

    # Don't pad tiny batches up to the M tile: clamp tm to the batch size
    # rounded to the dtype-correct sublane multiple.
    tm_eff = min(tm, _round_up(B, sub))
    Mp = _round_up(B, tm_eff)

    cur = _pad_2d(x, Mp, _round_up(Din, _LANE))
    n = len(params)
    for l, (w, b) in enumerate(params):
        din, dout = w.shape
        Kp = _round_up(din, _LANE)
        Np = _round_up(dout, _LANE)
        assert cur.shape[1] == Kp  # 128-padding chains layer-to-layer
        tk_l = _largest_tile(Kp, tk)
        tn_l = _largest_tile(Np, tn)
        # v7x megacore: if the parallel (M, N) grid would collapse to a single
        # step, split N so both TensorCores get work (no effect on v5e/v6e).
        if (Mp // tm_eff) * (Np // tn_l) < 2 and Np // _LANE >= 2:
            tn_l = _largest_tile(Np, Np // 2)
        w_p = _pad_2d(w, Kp, Np)                     # no copy when aligned
        b_p = _pad_2d(b.reshape(1, -1), 1, Np)
        cur = _pallas_linear_tiled(cur, w_p, b_p, apply_relu=(l < n - 1),
                                   tm=tm_eff, tn=tn_l, tk=tk_l)
    return cur[:B, :Dout]


# ---------------------------------------------------------------------------
# Public forward + init + reference.
# ---------------------------------------------------------------------------
def mlp_regressor_forward(x, params, *, compute_dtype=None):
    """Equivalent of MLPRegressor.forward: ReLU on all layers but the last."""
    B, Din = x.shape
    dtype = compute_dtype if compute_dtype is not None else x.dtype
    itemsize = jnp.dtype(dtype).itemsize
    sub = _sublane(dtype)
    kps = [_round_up(Din, _LANE)] + [_round_up(w.shape[1], _LANE)
                                     for w, _ in params]
    tmb = min(_round_up(B, sub), 512)
    # Fused footprint: weights (x2 for possible buffer duplication) + bias +
    # pipelined x/out tiles + ~3 live f32 activation temporaries at the
    # widest layer (the unrolled loop keeps them live in compiler scratch).
    weight_bytes = sum(kps[l] * kps[l + 1] + kps[l + 1]
                       for l in range(len(params))) * itemsize
    act_bytes = (2 * (tmb * kps[0] + tmb * kps[-1]) * itemsize
                 + 3 * tmb * max(kps) * 4)
    if 2 * weight_bytes + act_bytes <= _FUSED_VMEM_BUDGET_BYTES:
        return mlp_forward_fused(x, params, batch_tile=tmb,
                                 compute_dtype=compute_dtype)
    return mlp_forward_tiled(x, params, compute_dtype=compute_dtype)


def init_mlp_params(key, input_dimensions, output_dimensions, n_layers,
                    n_units, dtype=jnp.float32):
    """Deterministic init mirroring nn.Linear default (uniform +/- 1/sqrt(fan_in))."""
    params = []
    dim = input_dimensions
    dims = [n_units] * n_layers + [output_dimensions]
    for out_dim in dims:
        key, kw, kb = jax.random.split(key, 3)
        bound = 1.0 / jnp.sqrt(jnp.asarray(dim, dtype))
        # stored as (in, out) so the kernel does X @ W directly
        w = jax.random.uniform(kw, (dim, out_dim), dtype, -bound, bound)
        b = jax.random.uniform(kb, (1, out_dim), dtype, -bound, bound)
        params.append((w, b))
        dim = out_dim
    return params


def mlp_reference(x, params):
    ref = x
    for w, b in params[:-1]:
        ref = jnp.maximum(ref @ w + b, 0.0)
    return ref @ params[-1][0] + params[-1][1]


if __name__ == "__main__":
    # Small shapes consistent with the module's forward.
    batch = 8
    input_dimensions = 16
    output_dimensions = 4
    n_layers = 2
    n_units = 32

    key = jax.random.PRNGKey(0)
    key, kx = jax.random.split(key)
    x = jax.random.normal(kx, (batch, input_dimensions), jnp.float32)
    params = init_mlp_params(key, input_dimensions, output_dimensions,
                             n_layers, n_units)

    # Fused single-kernel path at the spec's small shapes.
    out = jax.block_until_ready(mlp_regressor_forward(x, params))
    ref = mlp_reference(x, params)
    assert out.shape == (batch, output_dimensions)
    assert jnp.allclose(out, ref, atol=5e-3, rtol=5e-3), \
        float(jnp.max(jnp.abs(out - ref)))

    # Tiled / gridded path at MXU-friendly shapes (f32 direct o_ref accumulation).
    key, kx2 = jax.random.split(key)
    x2 = jax.random.normal(kx2, (256, 256), jnp.float32)
    params2 = init_mlp_params(key, 256, 128, 2, 256)
    out2 = jax.block_until_ready(mlp_forward_tiled(x2, params2))
    ref2 = mlp_reference(x2, params2)
    assert out2.shape == (256, 128)
    assert jnp.allclose(out2, ref2, atol=2e-2, rtol=2e-2), \
        float(jnp.max(jnp.abs(out2 - ref2)))

    # bf16 MXU mode (f32 accumulation inside the kernel via the scratch variant).
    out3 = jax.block_until_ready(
        mlp_forward_tiled(x2, params2, compute_dtype=jnp.bfloat16))
    assert out3.shape == (256, 128)
    assert jnp.allclose(out3.astype(jnp.float32), ref2, atol=1.5e-1, rtol=1.5e-1), \
        float(jnp.max(jnp.abs(out3.astype(jnp.float32) - ref2)))

    print("KERNEL_OK")
</pallas_src>

<mosaic_0001>
module attributes {stable_mosaic.version = 11 : i64} {
  func.func @_fused_mlp_kernel(%arg0: i32, %arg1: memref<8x128xf32, #tpu.memory_space<vmem>>, %arg2: memref<128x128xf32, #tpu.memory_space<vmem>>, %arg3: memref<128x128xf32, #tpu.memory_space<vmem>>, %arg4: memref<128x128xf32, #tpu.memory_space<vmem>>, %arg5: memref<1x128xf32, #tpu.memory_space<vmem>>, %arg6: memref<1x128xf32, #tpu.memory_space<vmem>>, %arg7: memref<1x128xf32, #tpu.memory_space<vmem>>, %arg8: memref<8x128xf32, #tpu.memory_space<vmem>>) attributes {dimension_semantics = [#tpu.dimension_semantics<parallel>], iteration_bounds = array<i64: 1>, scalar_prefetch = 0 : i64, scratch_operands = 0 : i64, tpu.core_type = #tpu.core_type<tc>, window_params = [{transform_indices = @transform_0, window_bounds = array<i64: 8, 128>}, {pipeline_mode = #tpu.pipeline_mode<synchronous>, transform_indices = @transform_1, window_bounds = array<i64: 128, 128>}, {pipeline_mode = #tpu.pipeline_mode<synchronous>, transform_indices = @transform_2, window_bounds = array<i64: 128, 128>}, {pipeline_mode = #tpu.pipeline_mode<synchronous>, transform_indices = @transform_3, window_bounds = array<i64: 128, 128>}, {pipeline_mode = #tpu.pipeline_mode<synchronous>, transform_indices = @transform_4, window_bounds = array<i64: 1, 128>}, {pipeline_mode = #tpu.pipeline_mode<synchronous>, transform_indices = @transform_5, window_bounds = array<i64: 1, 128>}, {pipeline_mode = #tpu.pipeline_mode<synchronous>, transform_indices = @transform_6, window_bounds = array<i64: 1, 128>}, {transform_indices = @transform_7, window_bounds = array<i64: 8, 128>}]} {
    %c0 = arith.constant 0 : index
    %c0_0 = arith.constant 0 : index
    %0 = vector.load %arg1[%c0, %c0_0] : memref<8x128xf32, #tpu.memory_space<vmem>>, vector<8x128xf32>
    %c0_1 = arith.constant 0 : index
    %c0_2 = arith.constant 0 : index
    %1 = vector.load %arg2[%c0_1, %c0_2] : memref<128x128xf32, #tpu.memory_space<vmem>>, vector<128x128xf32>
    %cst = arith.constant dense<0.000000e+00> : vector<8x128xf32>
    %2 = tpu.matmul %0, %1, %cst {dimension_numbers = #tpu.dot_dimension_numbers<[1], [0], [0], [1], [0, 0, 1, 1], [], []>} : vector<8x128xf32>, vector<128x128xf32>, vector<8x128xf32> -> vector<8x128xf32>
    %c0_3 = arith.constant 0 : index
    %c0_4 = arith.constant 0 : index
    %3 = vector.load %arg5[%c0_3, %c0_4] : memref<1x128xf32, #tpu.memory_space<vmem>>, vector<1x128xf32>
    %4 = vector.broadcast %3 : vector<1x128xf32> to vector<8x128xf32>
    %5 = arith.addf %2, %4 : vector<8x128xf32>
    %cst_5 = arith.constant 0.000000e+00 : f32
    %6 = vector.broadcast %cst_5 : f32 to vector<8x128xf32>
    %7 = arith.maximumf %5, %6 : vector<8x128xf32>
    %c0_6 = arith.constant 0 : index
    %c0_7 = arith.constant 0 : index
    %8 = vector.load %arg3[%c0_6, %c0_7] : memref<128x128xf32, #tpu.memory_space<vmem>>, vector<128x128xf32>
    %cst_8 = arith.constant dense<0.000000e+00> : vector<8x128xf32>
    %9 = tpu.matmul %7, %8, %cst_8 {dimension_numbers = #tpu.dot_dimension_numbers<[1], [0], [0], [1], [0, 0, 1, 1], [], []>} : vector<8x128xf32>, vector<128x128xf32>, vector<8x128xf32> -> vector<8x128xf32>
    %c0_9 = arith.constant 0 : index
    %c0_10 = arith.constant 0 : index
    %10 = vector.load %arg6[%c0_9, %c0_10] : memref<1x128xf32, #tpu.memory_space<vmem>>, vector<1x128xf32>
    %11 = vector.broadcast %10 : vector<1x128xf32> to vector<8x128xf32>
    %12 = arith.addf %9, %11 : vector<8x128xf32>
    %cst_11 = arith.constant 0.000000e+00 : f32
    %13 = vector.broadcast %cst_11 : f32 to vector<8x128xf32>
    %14 = arith.maximumf %12, %13 : vector<8x128xf32>
    %c0_12 = arith.constant 0 : index
    %c0_13 = arith.constant 0 : index
    %15 = vector.load %arg4[%c0_12, %c0_13] : memref<128x128xf32, #tpu.memory_space<vmem>>, vector<128x128xf32>
    %cst_14 = arith.constant dense<0.000000e+00> : vector<8x128xf32>
    %16 = tpu.matmul %14, %15, %cst_14 {dimension_numbers = #tpu.dot_dimension_numbers<[1], [0], [0], [1], [0, 0, 1, 1], [], []>} : vector<8x128xf32>, vector<128x128xf32>, vector<8x128xf32> -> vector<8x128xf32>
    %c0_15 = arith.constant 0 : index
    %c0_16 = arith.constant 0 : index
    %17 = vector.load %arg7[%c0_15, %c0_16] : memref<1x128xf32, #tpu.memory_space<vmem>>, vector<1x128xf32>
    %18 = vector.broadcast %17 : vector<1x128xf32> to vector<8x128xf32>
    %19 = arith.addf %16, %18 : vector<8x128xf32>
    %c0_17 = arith.constant 0 : index
    %c0_18 = arith.constant 0 : index
    %20 = vector.load %arg8[%c0_17, %c0_18] : memref<8x128xf32, #tpu.memory_space<vmem>>, vector<8x128xf32>
    tpu.vector_store %arg8[%c0_17, %c0_18], %19 {strides = array<i32>} : memref<8x128xf32, #tpu.memory_space<vmem>>, vector<8x128xf32>,
    return
  }
  func.func @transform_0(%arg0: i32) -> (i32, i32) {
    %c0_i32 = arith.constant 0 : i32
    %c0_i32_0 = arith.constant 0 : i32
    return %arg0, %c0_i32 : i32, i32
  }
  func.func @transform_1(%arg0: i32) -> (i32, i32) {
    %c0_i32 = arith.constant 0 : i32
    %c0_i32_0 = arith.constant 0 : i32
    %c0_i32_1 = arith.constant 0 : i32
    return %c0_i32, %c0_i32_0 : i32, i32
  }
  func.func @transform_2(%arg0: i32) -> (i32, i32) {
    %c0_i32 = arith.constant 0 : i32
    %c0_i32_0 = arith.constant 0 : i32
    %c0_i32_1 = arith.constant 0 : i32
    return %c0_i32, %c0_i32_0 : i32, i32
  }
  func.func @transform_3(%arg0: i32) -> (i32, i32) {
    %c0_i32 = arith.constant 0 : i32
    %c0_i32_0 = arith.constant 0 : i32
    %c0_i32_1 = arith.constant 0 : i32
    return %c0_i32, %c0_i32_0 : i32, i32
  }
  func.func @transform_4(%arg0: i32) -> (i32, i32) {
    %c0_i32 = arith.constant 0 : i32
    %c0_i32_0 = arith.constant 0 : i32
    %c0_i32_1 = arith.constant 0 : i32
    return %c0_i32, %c0_i32_0 : i32, i32
  }
  func.func @transform_5(%arg0: i32) -> (i32, i32) {
    %c0_i32 = arith.constant 0 : i32
    %c0_i32_0 = arith.constant 0 : i32
    %c0_i32_1 = arith.constant 0 : i32
    return %c0_i32, %c0_i32_0 : i32, i32
  }
  func.func @transform_6(%arg0: i32) -> (i32, i32) {
    %c0_i32 = arith.constant 0 : i32
    %c0_i32_0 = arith.constant 0 : i32
    %c0_i32_1 = arith.constant 0 : i32
    return %c0_i32, %c0_i32_0 : i32, i32
  }
  func.func @transform_7(%arg0: i32) -> (i32, i32) {
    %c0_i32 = arith.constant 0 : i32
    %c0_i32_0 = arith.constant 0 : i32
    return %arg0, %c0_i32 : i32, i32
  }
}

</mosaic_0001>

<bundles_post_ra>
// kernel: tpu_custom_call.1
= control target key start
LH: loop header
LB: loop body
LE: loop exit
PB: predicated region body
PF: predicated region fallthrough
CT: control target
= control target key end

     0   :  { %12 = vsyncpa [#allocation3], 0  ;;  %s440_s0 = inlined_call_operand.hbm [shape: f32[8,128], index: 0, kind: input, shape index: {}]   ;;  %s441_s1 = inlined_call_operand.hbm [shape: f32[128,128], index: 1, kind: input, shape index: {}]   ;;  %s442_s2 = inlined_call_operand.hbm [shape: f32[128,128], index: 2, kind: input, shape index: {}]   ;;  %s443_s3 = inlined_call_operand.hbm [shape: f32[128,128], index: 3, kind: input, shape index: {}]   ;;  %s444_s4 = inlined_call_operand.vmem [shape: f32[1,128], index: 4, kind: input, shape index: {}]   ;;  %s445_s5 = inlined_call_operand.vmem [shape: f32[1,128], index: 5, kind: input, shape index: {}]   ;;  %s446_s6 = inlined_call_operand.vmem [shape: f32[1,128], index: 6, kind: input, shape index: {}]   ;;  %s447_s7 = inlined_call_operand.hbm [shape: f32[8,128], index: 7, kind: output, shape index: {}]  }
   0x1   :  { %13 = vsyncpa [#allocation6], 0 }
   0x2   :  { %14 = vsyncpa [#allocation9], 0  ;;  %s31_s26 = sshll.u32 %s441_s1, 4  ;;  %s32_s26 = int_to_ptr.hbm [resolvable:$true] %s31_s26 }
   0x3   :  { %15 = vsyncpa [#allocation4], 0  ;;  %s369_s27 = smov [#allocation5]   ;;  %s21_s8 = sshll.u32 %s440_s0, 4  ;;  %s22_s8 = int_to_ptr.hbm [resolvable:$true] %s21_s8 }
   0x4   :  { %s33_s28 = sshll.u32 %s369_s27, 4  ;;  %s370_s9 = smov 128   ;;  %s34_s28 = int_to_ptr.vmem [resolvable:$true] %s33_s28 }
   0x5   :  { %s371_s10 = smov 8   ;;  %s372_s11 = smov [#allocation2]  }
   0x6   :  { %39 = dma.hbm_to_vmem [thread:$0]  %s32_s26, 2048, %s34_s28, [#allocation6], %s370_s9, %s370_s9, %s371_s10  }
   0x7   :  { %s23_s12 = sshll.u32 %s372_s11, 4  ;;  %s44_s15 = sshll.u32 %s442_s2, 4  ;;  %s24_s12 = int_to_ptr.vmem [resolvable:$true] %s23_s12  ;;  %s45_s15 = int_to_ptr.hbm [resolvable:$true] %s44_s15 }
   0x8   :  { %26 = dma.hbm_to_vmem [thread:$0]  %s22_s8, 128, %s24_s12, [#allocation3]  }
   0x9   :  { %s57_s17 = sshll.u32 %s443_s3, 4  ;;  %s373_s18 = smov [#allocation7]   ;;  %s58_s17 = int_to_ptr.hbm [resolvable:$true] %s57_s17 }
   0xa   :  { %s46_s19 = sshll.u32 %s373_s18, 4  ;;  %s374_s0 = smov [#allocation8]   ;;  %s47_s19 = int_to_ptr.vmem [resolvable:$true] %s46_s19 }
   0xb   :  { %52 = dma.hbm_to_vmem [thread:$0]  %s45_s15, 2048, %s47_s19, [#allocation6], %s370_s9, %s370_s9, %s371_s10  }
   0xc   :  { %s59_s20 = sshll.u32 %s374_s0, 4  ;;  %s60_s20 = int_to_ptr.vmem [resolvable:$true] %s59_s20 }
   0xd   :  { %65 = dma.hbm_to_vmem [thread:$0]  %s58_s17, 2048, %s60_s20, [#allocation9], %s370_s9, %s370_s9, %s371_s10  }
   0xe   :  { %361 = dma.done.wait [#allocation3], 128  }
   0xf   :  { %362 = vsyncadd [#allocation3], 4294967168 }
  0x10   :  { %363 = dma.done.wait [#allocation6], 4096  }
  0x11   :  { %364 = vsyncadd [#allocation6], 4294963200 }
  0x12   :  { %365 = dma.done.wait [#allocation9], 2048  }
  0x13   :  { %366 = vsyncadd [#allocation9], 4294965248  ;;  %v104_v0 = vld [vmem:[#allocation5 + $0x78] sm:$0xff]  ;;  %v103_v1 = vld [vmem:[#allocation5 + $0x70] sm:$0xff]  ;;  %s375_s24 = smov [#allocation10]   ;;  %s219_s28 = sshll.u32 %s447_s7, 4  ;;  %s220_s28 = int_to_ptr.hbm [resolvable:$true] %s219_s28 }
  0x14   :  { %109 = vmatpush.msra.mxu0 %v104_v0  ;;  %v102_v2 = vld [vmem:[#allocation5 + $0x68] sm:$0xff]  ;;  %v101_v3 = vld [vmem:[#allocation5 + $0x60] sm:$0xff]  ;;  %v145_v4 = vld [vmem:[#allocation7 + $0x78] sm:$0xff]  ;;  %s217_s25 = sshll.u32 %s375_s24, 4  ;;  %s218_s25 = int_to_ptr.vmem [resolvable:$true] %s217_s25 }
  0x15   :  { %v100_v5 = vld [vmem:[#allocation5 + $0x58] sm:$0xff]  ;;  %150 = vmatpush.msra.mxu1 %v145_v4  ;;  %v144_v6 = vld [vmem:[#allocation7 + $0x70] sm:$0xff]  ;;  %v143_v7 = vld [vmem:[#allocation7 + $0x68] sm:$0xff] }
  0x16   :  { %110 = vmatpush.msra.mxu0 %v103_v1  ;;  %v99_v8 = vld [vmem:[#allocation5 + $0x50] sm:$0xff]  ;;  %v142_v9 = vld [vmem:[#allocation7 + $0x60] sm:$0xff]  ;;  %v98_v10 = vld [vmem:[#allocation5 + $0x48] sm:$0xff] }
  0x17   :  { %151 = vmatpush.msra.mxu1 %v144_v6  ;;  %v141_v11 = vld [vmem:[#allocation7 + $0x58] sm:$0xff]  ;;  %v97_v12 = vld [vmem:[#allocation5 + $0x40] sm:$0xff]  ;;  %v140_v13 = vld [vmem:[#allocation7 + $0x50] sm:$0xff] }
  0x18   :  { %111 = vmatpush.msra.mxu0 %v102_v2  ;;  %v96_v14 = vld [vmem:[#allocation5 + $0x38] sm:$0xff]  ;;  %v139_v15 = vld [vmem:[#allocation7 + $0x48] sm:$0xff]  ;;  %v95_v16 = vld [vmem:[#allocation5 + $0x30] sm:$0xff] }
  0x19   :  { %152 = vmatpush.msra.mxu1 %v143_v7  ;;  %v138_v17 = vld [vmem:[#allocation7 + $0x40] sm:$0xff]  ;;  %v94_v18 = vld [vmem:[#allocation5 + $0x28] sm:$0xff]  ;;  %v137_v19 = vld [vmem:[#allocation7 + $0x38] sm:$0xff] }
  0x1a   :  { %112 = vmatpush.msra.mxu0 %v101_v3  ;;  %v93_v20 = vld [vmem:[#allocation5 + $0x20] sm:$0xff]  ;;  %v136_v21 = vld [vmem:[#allocation7 + $0x30] sm:$0xff]  ;;  %v92_v22 = vld [vmem:[#allocation5 + $0x18] sm:$0xff] }
  0x1b   :  { %153 = vmatpush.msra.mxu1 %v142_v9  ;;  %v135_v23 = vld [vmem:[#allocation7 + $0x28] sm:$0xff]  ;;  %v91_v24 = vld [vmem:[#allocation5 + $0x10] sm:$0xff]  ;;  %v134_v25 = vld [vmem:[#allocation7 + $0x20] sm:$0xff] }
  0x1c   :  { %113 = vmatpush.msra.mxu0 %v100_v5  ;;  %v90_v26 = vld [vmem:[#allocation5 + $0x8] sm:$0xff]  ;;  %v133_v27 = vld [vmem:[#allocation7 + $0x18] sm:$0xff]  ;;  %v89_v28 = vld [vmem:[#allocation5] sm:$0xff] }
  0x1d   :  { %154 = vmatpush.msra.mxu1 %v141_v11  ;;  %v88_v29 = vld [vmem:[#allocation2] sm:$0xff]  ;;  %v132_v30 = vld [vmem:[#allocation7 + $0x10] sm:$0xff]  ;;  %v131_v31 = vld [vmem:[#allocation7 + $0x8] sm:$0xff] }
  0x1e   :  { %114 = vmatpush.msra.mxu0 %v99_v8  ;;  %v130_v32 = vld [vmem:[#allocation7] sm:$0xff]  ;;  %v186_v33 = vld [vmem:[#allocation8 + $0x78] sm:$0xff]  ;;  %v185_v34 = vld [vmem:[#allocation8 + $0x70] sm:$0xff] }
  0x1f   :  { %155 = vmatpush.msra.mxu1 %v140_v13  ;;  %191 = vmatpush.msra.mxu2 %v186_v33  ;;  %v184_v35 = vld [vmem:[#allocation8 + $0x68] sm:$0xff]  ;;  %v183_v36 = vld [vmem:[#allocation8 + $0x60] sm:$0xff]  ;;  %v182_v37 = vld [vmem:[#allocation8 + $0x58] sm:$0xff] }
  0x20   :  { %115 = vmatpush.msra.mxu0 %v98_v10  ;;  %v181_v38 = vld [vmem:[#allocation8 + $0x50] sm:$0xff]  ;;  %v180_v39 = vld [vmem:[#allocation8 + $0x48] sm:$0xff]  ;;  %v179_v40 = vld [vmem:[#allocation8 + $0x40] sm:$0xff] }
  0x21   :  { %156 = vmatpush.msra.mxu1 %v139_v15  ;;  %192 = vmatpush.msra.mxu2 %v185_v34  ;;  %v178_v41 = vld [vmem:[#allocation8 + $0x38] sm:$0xff]  ;;  %v177_v42 = vld [vmem:[#allocation8 + $0x30] sm:$0xff]  ;;  %v176_v43 = vld [vmem:[#allocation8 + $0x28] sm:$0xff] }
  0x22   :  { %116 = vmatpush.msra.mxu0 %v97_v12  ;;  %v175_v44 = vld [vmem:[#allocation8 + $0x20] sm:$0xff]  ;;  %v174_v45 = vld [vmem:[#allocation8 + $0x18] sm:$0xff]  ;;  %v173_v50 = vld [vmem:[#allocation8 + $0x10] sm:$0xff] }
  0x23   :  { %157 = vmatpush.msra.mxu1 %v138_v17  ;;  %193 = vmatpush.msra.mxu2 %v184_v35  ;;  %v238_v46 = vld [vmem:[%s444_s4] ss:$0 sm:$0xff]  ;;  %v172_v51 = vld [vmem:[#allocation8 + $0x8] sm:$0xff]  ;;  %v171_v52 = vld [vmem:[#allocation8] sm:$0xff] }
  0x24   :  { %117 = vmatpush.msra.mxu0 %v96_v14  ;;  %v239_v53 = vld [vmem:[%s445_s5] ss:$0 sm:$0xff] }
  0x25   :  { %158 = vmatpush.msra.mxu1 %v137_v19  ;;  %194 = vmatpush.msra.mxu2 %v183_v36  ;;  %v240_v57 = vld [vmem:[%s446_s6] ss:$0 sm:$0xff] }
  0x26   :  { %118 = vmatpush.msra.mxu0 %v95_v16 }
  0x27   :  { %159 = vmatpush.msra.mxu1 %v136_v21  ;;  %195 = vmatpush.msra.mxu2 %v182_v37 }
  0x28   :  { %119 = vmatpush.msra.mxu0 %v94_v18 }
  0x29   :  { %160 = vmatpush.msra.mxu1 %v135_v23  ;;  %196 = vmatpush.msra.mxu2 %v181_v38 }
  0x2a   :  { %120 = vmatpush.msra.mxu0 %v93_v20 }
  0x2b   :  { %161 = vmatpush.msra.mxu1 %v134_v25  ;;  %197 = vmatpush.msra.mxu2 %v180_v39 }
  0x2c   :  { %121 = vmatpush.msra.mxu0 %v92_v22 }
  0x2d   :  { %162 = vmatpush.msra.mxu1 %v133_v27  ;;  %198 = vmatpush.msra.mxu2 %v179_v40 }
  0x2e   :  { %122 = vmatpush.msra.mxu0 %v91_v24 }
  0x2f   :  { %163 = vmatpush.msra.mxu1 %v132_v30  ;;  %199 = vmatpush.msra.mxu2 %v178_v41 }
  0x30   :  { %123 = vmatpush.msra.mxu0 %v90_v26 }
  0x31   :  { %164 = vmatpush.msra.mxu1 %v131_v31  ;;  %200 = vmatpush.msra.mxu2 %v177_v42 }
  0x32   :  { %124 = vmatpush.msra.mxu0 %v89_v28 }
  0x33   :  { %125 = vmatmul.f32.vlgmr.msra.gmra.mxu0 %v88_v29  ;;  %165 = vmatpush.msra.mxu1 %v130_v32 }
  0x34   :  { %201 = vmatpush.msra.mxu2 %v176_v43 }
  0x36   :  { %202 = vmatpush.msra.mxu2 %v175_v44 }
  0x38   :  { %203 = vmatpush.msra.mxu2 %v174_v45 }
  0x3a   :  { %204 = vmatpush.msra.mxu2 %v173_v50 }
  0x3c   :  { %205 = vmatpush.msra.mxu2 %v172_v51 }
  0x3e   :  { %206 = vmatpush.msra.mxu2 %v171_v52 }
  0xb0   :  { %v126_v47 = vpop.f32.mrf.mxu0 }
  0xb1   :  { %v127_v48 = vadd.f32 %v238_v46, %v126_v47 }
  0xb3   :  { %v129_v49 = vmax.f32 %v127_v48, 0.0 }
  0xb5   :  { %166 = vmatmul.f32.vlgmr.msra.gmra.mxu1 %v129_v49 }
 0x132   :  { %v167_v54 = vpop.f32.mrf.mxu1 }
 0x133   :  { %v168_v55 = vadd.f32 %v239_v53, %v167_v54 }
 0x135   :  { %v170_v56 = vmax.f32 %v168_v55, 0.0 }
 0x137   :  { %207 = vmatmul.f32.vlgmr.msra.gmra.mxu2 %v170_v56 }
 0x1ba   :  { %v208_v58 = vpop.f32.mrf.mxu2 }
 0x1bb   :  { %v209_v59 = vadd.f32 %v240_v57, %v208_v58 }
 0x1bd   :  { %211 = vst [vmem:[#allocation10] sm:$0xff] %v209_v59 }
 0x1be   :  { %222 = dma.vmem_to_hbm [thread:$0]  %s218_s25, 128, %s220_s28, [#allocation4]  }
 0x1bf   :  { %367 = dma.done.wait [#allocation4], 128  }
 0x1c0   :  { %368 = vsyncadd [#allocation4], 4294967168 }
 0x1c1   :  { %227 = vsyncpa [#allocation3], 1 }
 0x1c2   :  { %228 = vsyncpa [#allocation6], 1 }
 0x1c3   :  { %229 = vsyncpa [#allocation9], 1 }
 0x1c4   :  { %230 = vsyncpa [#allocation4], 1 }

</bundles_post_ra>
